<compile_context>
chip_gen: v6e
topology: v6e:2x2x1
jax: 0.10.0
libtpu: 0.0.40
codegen_flags: <defaults>
</compile_context>

<pallas_src>
import numpy as np
import jax
import jax.numpy as jnp
from jax.experimental import pallas as pl
from jax.experimental.pallas import tpu as pltpu

MATMUL_DTYPE = jnp.bfloat16        # FF matmul operand dtype (accumulation is always f32)


def _cdiv(a, b):
    return -(-a // b)


def _round_up(x, m):
    return _cdiv(x, m) * m


def _vmem_limit_bytes():
    """Scoped-VMEM budget gated on the chip: spend more on 128 MiB parts, stay <=48 MiB on v7x."""
    try:
        cap = pltpu.get_tpu_info().vmem_capacity_bytes
    except Exception:
        cap = 64 * 1024 * 1024
    return (80 if cap >= 100 * 1024 * 1024 else 48) * 1024 * 1024


# ----------------------------------------------------------------------------
# Truncated ortho rfft / irfft as concatenated real matrices (exact, f64 -> f32).
# ----------------------------------------------------------------------------
def _dft_bases(L, M, Mp):
    """F: (2*Mp, L) forward basis [cos; -sin]/sqrt(L); G: (L, 2*Mp) inverse basis
    with Hermitian fold-back weights folded in.  Rows/cols for padded modes are zero."""
    l = np.arange(L)[:, None].astype(np.float64)
    m = np.arange(M)[None, :].astype(np.float64)
    ang = 2.0 * np.pi * l * m / L
    scale = 1.0 / np.sqrt(L)
    cos = np.cos(ang) * scale            # (L, M)
    sin = np.sin(ang) * scale            # (L, M)

    c = np.full((M,), 2.0)
    c[0] = 1.0
    if L % 2 == 0 and M - 1 == L // 2:
        c[-1] = 1.0

    F = np.zeros((2 * Mp, L), np.float64)
    F[:M, :] = cos.T
    F[Mp:Mp + M, :] = -sin.T
    G = np.zeros((L, 2 * Mp), np.float64)
    G[:, :M] = cos * c[None, :]
    G[:, Mp:Mp + M] = -sin * c[None, :]
    return F, G


def _pick_batch_tile(B, L, n_in, n_out, max_batch_tile, vmem_budget):
    """cdiv-based batch tile: >=2 grid steps when B > 1, shrink to fit the VMEM budget."""
    bt = max(1, min(max_batch_tile, _cdiv(B, 2)))

    def footprint(b):
        blocks = b * L * (n_in + 2 * n_out) * 4 * 2            # double-buffered activation blocks
        scratch = b * L * (n_in + 2 * n_out) * 4               # in-kernel VMEM scratch
        return blocks + scratch

    while bt > 1 and footprint(bt) > vmem_budget // 2:
        bt //= 2
    return bt


# ----------------------------------------------------------------------------
# Fused Fourier + (fork) FeedForward kernel builder.
# ----------------------------------------------------------------------------
def _make_fused_kernel(*, bt, L, n_in, n_out, mp, hp, mode, use_fork, use_proj):
    full = (mode == "full")
    nofourier = (mode == "no-fourier")

    def kernel(*args):
        it = iter(args)
        x_ref = next(it)
        if not nofourier:
            if use_proj:
                p_ref = next(it)
            else:
                f_ref = next(it)
                g_ref = next(it)
            if full:
                wr_ref = next(it)
                wi_ref = next(it)
        w1_ref = next(it)
        b1_ref = next(it)
        w2b_ref = next(it)
        b2b_ref = next(it)
        if use_fork:
            w2f_ref = next(it)
            b2f_ref = next(it)
        ob_ref = next(it)
        if use_fork:
            of_ref = next(it)
        if not nofourier:
            xcat_ref = next(it)                  # (L, bt*n_in)  lane-packed block
            if full:
                oo_ref = next(it)                # (2*mp, bt*n_out) mixed spectrum
        y2_ref = next(it)                        # (bt*L, n_out) FF-row activations

        f32 = jnp.float32

        # ---------------- Fourier stage -> y2_ref (bt*L, n_out) ----------------
        if nofourier:
            for b in range(bt):
                y2_ref[b * L:(b + 1) * L, :] = x_ref[b].astype(f32)
        else:
            # pack the batch block along the lane axis: X = (L, bt*n_in)
            for b in range(bt):
                xcat_ref[:, b * n_in:(b + 1) * n_in] = x_ref[b].astype(f32)
            X = xcat_ref[...]
            if use_proj:
                # low-pass with 4*mp >= L: single (L, L) truncated-mode projection
                Y = jnp.dot(p_ref[...], X, preferred_element_type=f32)        # (L, bt*n_out)
            else:
                # forward DFT: ONE lane-dense matmul for the whole batch block
                XF = jnp.dot(f_ref[...], X, preferred_element_type=f32)       # (2*mp, bt*n_in)
                if full:
                    # per-mode channel mixing (VPU), results scattered in place
                    for b in range(bt):
                        xr = XF[:mp, b * n_in:(b + 1) * n_in]                 # (mp, n_in)
                        xi = XF[mp:, b * n_in:(b + 1) * n_in]
                        out_r = jnp.zeros((mp, n_out), f32)
                        out_i = jnp.zeros((mp, n_out), f32)
                        for i in range(n_in):                                 # static unroll
                            wr_i = wr_ref[i]                                  # (mp, n_out)
                            wi_i = wi_ref[i]
                            xr_i = xr[:, i:i + 1]
                            xi_i = xi[:, i:i + 1]
                            out_r = out_r + xr_i * wr_i - xi_i * wi_i
                            out_i = out_i + xr_i * wi_i + xi_i * wr_i
                        oo_ref[:mp, b * n_out:(b + 1) * n_out] = out_r
                        oo_ref[mp:, b * n_out:(b + 1) * n_out] = out_i
                    spec = oo_ref[...]
                else:
                    spec = XF          # 'low-pass': truncated spectrum passes through
                # inverse DFT: ONE lane-dense matmul
                Y = jnp.dot(g_ref[...], spec, preferred_element_type=f32)     # (L, bt*n_out)
            # regroup the (L, bt*n_out) slab into FF-row layout (bt*L, n_out)
            for b in range(bt):
                y2_ref[b * L:(b + 1) * L, :] = Y[:, b * n_out:(b + 1) * n_out]

        # --------------- fused (fork) FeedForward on (bt*L, n_out) rows ---------------
        xrow = y2_ref[...].astype(MATMUL_DTYPE)
        h = jnp.dot(xrow, w1_ref[...], preferred_element_type=f32) + b1_ref[...]
        h = jnp.maximum(h, 0.0).astype(MATMUL_DTYPE)                          # (bt*L, 2*hp | H)
        hb = h[:, :hp] if use_fork else h
        yb = jnp.dot(hb, w2b_ref[...], preferred_element_type=f32) + b2b_ref[...]
        ob_ref[...] = yb.reshape(bt, L, n_out).astype(ob_ref.dtype)
        if use_fork:
            yf = jnp.dot(h[:, hp:], w2f_ref[...], preferred_element_type=f32) + b2f_ref[...]
            of_ref[...] = yf.reshape(bt, L, n_out).astype(of_ref.dtype)

    return kernel


# ----------------------------------------------------------------------------
# Module forward: x (B, L, in_dim) -> (backcast, forecast)
# ----------------------------------------------------------------------------
def spectral_conv1d_forward(x, params, *, n_modes, mode="full", use_fork=True,
                            max_batch_tile=8):
    # TODO(synk): FeedForward options ff_weight_norm / layer_norm / dropout>0 are not
    # implemented; this is the plain Linear->ReLU->Linear eval-mode configuration.
    if mode not in ("full", "low-pass", "no-fourier"):
        raise ValueError(f"unknown fourier mode: {mode}")
    B, L, n_in = x.shape
    if mode != "no-fourier" and n_modes > L // 2 + 1:
        raise ValueError(f"n_modes={n_modes} > L//2+1={L // 2 + 1}: modes would alias")

    n_out = params["w_real"].shape[1] if mode == "full" else n_in
    D = n_out

    vmem_budget = _vmem_limit_bytes()
    bt = _pick_batch_tile(B, L, n_in, n_out, max_batch_tile, vmem_budget)
    nb = _cdiv(B, bt)
    mp = _round_up(max(n_modes, 1), 8) if mode != "no-fourier" else 0

    # ---- operands + in_specs (order must match the kernel unpack order) ----
    operands = [x]
    in_specs = [pl.BlockSpec((bt, L, n_in), lambda g: (g, 0, 0))]
    use_proj = False
    if mode != "no-fourier":
        Fnp, Gnp = _dft_bases(L, n_modes, mp)
        use_proj = (mode == "low-pass") and (4 * mp >= L)
        if use_proj:
            P = jnp.asarray(Gnp @ Fnp, jnp.float32)               # (L, L) projection
            operands.append(P)
            in_specs.append(pl.BlockSpec((L, L), lambda g: (0, 0)))
        else:
            operands += [jnp.asarray(Fnp, jnp.float32), jnp.asarray(Gnp, jnp.float32)]
            in_specs += [pl.BlockSpec((2 * mp, L), lambda g: (0, 0)),
                         pl.BlockSpec((L, 2 * mp), lambda g: (0, 0))]
        if mode == "full":
            wr = jnp.zeros((n_in, mp, n_out), jnp.float32).at[:, :n_modes, :].set(
                jnp.transpose(params["w_real"], (0, 2, 1)).astype(jnp.float32))
            wi = jnp.zeros((n_in, mp, n_out), jnp.float32).at[:, :n_modes, :].set(
                jnp.transpose(params["w_imag"], (0, 2, 1)).astype(jnp.float32))
            w_spec = pl.BlockSpec((n_in, mp, n_out), lambda g: (0, 0, 0))
            operands += [wr, wi]
            in_specs += [w_spec, w_spec]

    # FeedForward weights (hidden width padded to a multiple of 128 for the fork split)
    w1b, b1b, w2b, b2b = params["backcast_ff"]
    H = w1b.shape[1]
    if use_fork:
        w1f, b1f, w2f, b2f = params["forecast_ff"]
        hp = _round_up(H, 128)

        def pad1(w, b):
            return (jnp.zeros((D, hp), jnp.float32).at[:, :H].set(w),
                    jnp.zeros((1, hp), jnp.float32).at[:, :H].set(b))

        w1b_p, b1b_p = pad1(w1b, b1b)
        w1f_p, b1f_p = pad1(w1f, b1f)
        w1 = jnp.concatenate([w1b_p, w1f_p], axis=1).astype(MATMUL_DTYPE)   # (D, 2*hp)
        b1 = jnp.concatenate([b1b_p, b1f_p], axis=1)                        # (1, 2*hp) f32
        w2b_p = jnp.zeros((hp, D), jnp.float32).at[:H].set(w2b).astype(MATMUL_DTYPE)
        w2f_p = jnp.zeros((hp, D), jnp.float32).at[:H].set(w2f).astype(MATMUL_DTYPE)
        operands += [w1, b1, w2b_p, b2b.astype(jnp.float32),
                     w2f_p, b2f.astype(jnp.float32)]
        in_specs += [pl.BlockSpec((D, 2 * hp), lambda g: (0, 0)),
                     pl.BlockSpec((1, 2 * hp), lambda g: (0, 0)),
                     pl.BlockSpec((hp, D), lambda g: (0, 0)),
                     pl.BlockSpec((1, D), lambda g: (0, 0)),
                     pl.BlockSpec((hp, D), lambda g: (0, 0)),
                     pl.BlockSpec((1, D), lambda g: (0, 0))]
    else:
        hp = H
        operands += [w1b.astype(MATMUL_DTYPE), b1b.astype(jnp.float32),
                     w2b.astype(MATMUL_DTYPE), b2b.astype(jnp.float32)]
        in_specs += [pl.BlockSpec((D, H), lambda g: (0, 0)),
                     pl.BlockSpec((1, H), lambda g: (0, 0)),
                     pl.BlockSpec((H, D), lambda g: (0, 0)),
                     pl.BlockSpec((1, D), lambda g: (0, 0))]

    out_spec = pl.BlockSpec((bt, L, D), lambda g: (g, 0, 0))
    if use_fork:
        out_shape = (jax.ShapeDtypeStruct((B, L, D), x.dtype),
                     jax.ShapeDtypeStruct((B, L, D), x.dtype))
        out_specs = (out_spec, out_spec)
    else:
        out_shape = jax.ShapeDtypeStruct((B, L, D), x.dtype)
        out_specs = out_spec

    scratch_shapes = []
    if mode != "no-fourier":
        scratch_shapes.append(pltpu.VMEM((L, bt * n_in), jnp.float32))           # packed block
        if mode == "full":
            scratch_shapes.append(pltpu.VMEM((2 * mp, bt * n_out), jnp.float32))  # mixed spectrum
    scratch_shapes.append(pltpu.VMEM((bt * L, n_out), jnp.float32))              # FF rows

    kernel = _make_fused_kernel(bt=bt, L=L, n_in=n_in, n_out=n_out, mp=mp, hp=hp,
                                mode=mode, use_fork=use_fork, use_proj=use_proj)

    res = pl.pallas_call(
        kernel,
        grid=(nb,),
        in_specs=in_specs,
        out_specs=out_specs,
        out_shape=out_shape,
        scratch_shapes=scratch_shapes,
        compiler_params=pltpu.CompilerParams(
            dimension_semantics=("parallel",),
            vmem_limit_bytes=vmem_budget,
        ),
    )(*operands)

    if use_fork:
        return res
    return res, None


# ----------------------------------------------------------------------------
# Deterministic parameter init (shapes from the module's __init__).
# ----------------------------------------------------------------------------
def init_params(key, in_dim, out_dim, n_modes, factor):
    ks = jax.random.split(key, 5)
    # nn.init.xavier_normal_ on (in_dim, out_dim, n_modes, 2)
    recept = n_modes * 2
    std = float(np.sqrt(2.0 / (out_dim * recept + in_dim * recept)))
    w = jax.random.normal(ks[0], (in_dim, out_dim, n_modes, 2), dtype=jnp.float32) * std

    def linear(k, d_in, d_out):
        kw, kb = jax.random.split(k)
        bound = 1.0 / np.sqrt(d_in)
        wt = jax.random.uniform(kw, (d_in, d_out), jnp.float32, -bound, bound)
        bs = jax.random.uniform(kb, (1, d_out), jnp.float32, -bound, bound)
        return wt, bs

    hidden = out_dim * factor
    backcast = linear(ks[1], out_dim, hidden) + linear(ks[2], hidden, out_dim)
    forecast = linear(ks[3], out_dim, hidden) + linear(ks[4], hidden, out_dim)
    return {
        "w_real": w[..., 0],            # (I, O, M)
        "w_imag": w[..., 1],            # (I, O, M)
        "backcast_ff": backcast,        # (w1, b1, w2, b2)
        "forecast_ff": forecast,        # (w1, b1, w2, b2)
    }


# ----------------------------------------------------------------------------
# Pure-JAX reference (jnp.fft, f32) for correctness checking (handles O != I).
# ----------------------------------------------------------------------------
def reference_forward(x, params, *, n_modes, mode="full", use_fork=True):
    B, L, _ = x.shape
    if mode != "no-fourier":
        xt = jnp.transpose(x, (0, 2, 1))                          # (B, I, L)
        x_ft = jnp.fft.rfft(xt, axis=-1, norm="ortho")
        if mode == "full":
            w = params["w_real"] + 1j * params["w_imag"]          # (I, O, M)
            mixed = jnp.einsum("bix,iox->box",
                               x_ft[:, :, :n_modes], w.astype(x_ft.dtype))
        else:  # 'low-pass'
            mixed = x_ft[:, :, :n_modes]
        O = mixed.shape[1]
        out_ft = jnp.zeros((B, O, L // 2 + 1), dtype=x_ft.dtype)
        out_ft = out_ft.at[:, :, :n_modes].set(mixed)
        y = jnp.fft.irfft(out_ft, n=L, axis=-1, norm="ortho")
        x = jnp.transpose(y, (0, 2, 1))

    def ff(z, p):
        w1, b1, w2, b2 = p
        h = jnp.maximum(z @ w1 + b1[0], 0.0)
        return h @ w2 + b2[0]

    b = ff(x, params["backcast_ff"])
    f = ff(x, params["forecast_ff"]) if use_fork else None
    return b, f


if __name__ == "__main__":
    B, L = 2, 16            # batch, sequence length
    in_dim = out_dim = 4    # module only makes sense with in_dim == out_dim
    n_modes = 5
    factor = 2
    mode = "full"
    use_fork = True

    key = jax.random.PRNGKey(0)
    kx, kp = jax.random.split(key)
    x = jax.random.normal(kx, (B, L, in_dim), dtype=jnp.float32)
    params = init_params(kp, in_dim, out_dim, n_modes, factor)

    b, f = spectral_conv1d_forward(x, params, n_modes=n_modes, mode=mode, use_fork=use_fork)
    jax.block_until_ready(b)
    if f is not None:
        jax.block_until_ready(f)

    b_ref, f_ref = reference_forward(x, params, n_modes=n_modes, mode=mode, use_fork=use_fork)
    # DFT bases + per-mode mixing run in f32; only the FF matmuls use bf16 MXU operands
    # (with f32 accumulation), so the remaining error budget is ~1e-2 absolute.
    np.testing.assert_allclose(np.asarray(b), np.asarray(b_ref), rtol=3e-2, atol=3e-2)
    if use_fork:
        np.testing.assert_allclose(np.asarray(f), np.asarray(f_ref), rtol=3e-2, atol=3e-2)

    print("KERNEL_OK")
</pallas_src>

<mosaic_0001>
module attributes {stable_mosaic.version = 11 : i64} {
  func.func @kernel(%arg0: i32, %arg1: memref<1x16x4xf32, #tpu.memory_space<vmem>>, %arg2: memref<16x16xf32, #tpu.memory_space<vmem>>, %arg3: memref<16x16xf32, #tpu.memory_space<vmem>>, %arg4: memref<4x8x4xf32, #tpu.memory_space<vmem>>, %arg5: memref<4x8x4xf32, #tpu.memory_space<vmem>>, %arg6: memref<4x256xbf16, #tpu.memory_space<vmem>>, %arg7: memref<1x256xf32, #tpu.memory_space<vmem>>, %arg8: memref<128x4xbf16, #tpu.memory_space<vmem>>, %arg9: memref<1x4xf32, #tpu.memory_space<vmem>>, %arg10: memref<128x4xbf16, #tpu.memory_space<vmem>>, %arg11: memref<1x4xf32, #tpu.memory_space<vmem>>, %arg12: memref<1x16x4xf32, #tpu.memory_space<vmem>>, %arg13: memref<1x16x4xf32, #tpu.memory_space<vmem>>, %arg14: memref<16x4xf32, #tpu.memory_space<vmem>>, %arg15: memref<16x4xf32, #tpu.memory_space<vmem>>, %arg16: memref<16x4xf32, #tpu.memory_space<vmem>>) attributes {dimension_semantics = [#tpu.dimension_semantics<parallel>], iteration_bounds = array<i64: 2>, scalar_prefetch = 0 : i64, scratch_operands = 3 : i64, tpu.core_type = #tpu.core_type<tc>, window_params = [{transform_indices = @transform_0, window_bounds = array<i64: 1, 16, 4>}, {pipeline_mode = #tpu.pipeline_mode<synchronous>, transform_indices = @transform_1, window_bounds = array<i64: 16, 16>}, {pipeline_mode = #tpu.pipeline_mode<synchronous>, transform_indices = @transform_2, window_bounds = array<i64: 16, 16>}, {pipeline_mode = #tpu.pipeline_mode<synchronous>, transform_indices = @transform_3, window_bounds = array<i64: 4, 8, 4>}, {pipeline_mode = #tpu.pipeline_mode<synchronous>, transform_indices = @transform_4, window_bounds = array<i64: 4, 8, 4>}, {pipeline_mode = #tpu.pipeline_mode<synchronous>, transform_indices = @transform_5, window_bounds = array<i64: 4, 256>}, {pipeline_mode = #tpu.pipeline_mode<synchronous>, transform_indices = @transform_6, window_bounds = array<i64: 1, 256>}, {pipeline_mode = #tpu.pipeline_mode<synchronous>, transform_indices = @transform_7, window_bounds = array<i64: 128, 4>}, {pipeline_mode = #tpu.pipeline_mode<synchronous>, transform_indices = @transform_8, window_bounds = array<i64: 1, 4>}, {pipeline_mode = #tpu.pipeline_mode<synchronous>, transform_indices = @transform_9, window_bounds = array<i64: 128, 4>}, {pipeline_mode = #tpu.pipeline_mode<synchronous>, transform_indices = @transform_10, window_bounds = array<i64: 1, 4>}, {transform_indices = @transform_11, window_bounds = array<i64: 1, 16, 4>}, {transform_indices = @transform_12, window_bounds = array<i64: 1, 16, 4>}]} {
    %c0 = arith.constant 0 : index
    %c0_0 = arith.constant 0 : index
    %c0_1 = arith.constant 0 : index
    %0 = vector.load %arg1[%c0, %c0_0, %c0_1] : memref<1x16x4xf32, #tpu.memory_space<vmem>>, vector<1x16x4xf32>
    %1 = vector.shape_cast %0 : vector<1x16x4xf32> to vector<16x4xf32>
    %c0_2 = arith.constant 0 : index
    %c0_3 = arith.constant 0 : index
    %2 = vector.load %arg14[%c0_2, %c0_3] : memref<16x4xf32, #tpu.memory_space<vmem>>, vector<16x4xf32>
    tpu.vector_store %arg14[%c0_2, %c0_3], %1 {strides = array<i32>} : memref<16x4xf32, #tpu.memory_space<vmem>>, vector<16x4xf32>,
    %c0_4 = arith.constant 0 : index
    %c0_5 = arith.constant 0 : index
    %3 = vector.load %arg14[%c0_4, %c0_5] : memref<16x4xf32, #tpu.memory_space<vmem>>, vector<16x4xf32>
    %c0_6 = arith.constant 0 : index
    %c0_7 = arith.constant 0 : index
    %4 = vector.load %arg2[%c0_6, %c0_7] : memref<16x16xf32, #tpu.memory_space<vmem>>, vector<16x16xf32>
    %cst = arith.constant dense<0.000000e+00> : vector<16x4xf32>
    %5 = tpu.matmul %4, %3, %cst {dimension_numbers = #tpu.dot_dimension_numbers<[1], [0], [0], [1], [0, 0, 1, 1], [], []>} : vector<16x16xf32>, vector<16x4xf32>, vector<16x4xf32> -> vector<16x4xf32>
    %6 = vector.extract_strided_slice %5 {offsets = [0, 0], sizes = [8, 4], strides = [1, 1]} : vector<16x4xf32> to vector<8x4xf32>
    %7 = vector.extract_strided_slice %5 {offsets = [8, 0], sizes = [8, 4], strides = [1, 1]} : vector<16x4xf32> to vector<8x4xf32>
    %cst_8 = arith.constant 0.000000e+00 : f32
    %8 = vector.broadcast %cst_8 : f32 to vector<8x4xf32>
    %cst_9 = arith.constant 0.000000e+00 : f32
    %9 = vector.broadcast %cst_9 : f32 to vector<8x4xf32>
    %c0_10 = arith.constant 0 : index
    %c0_11 = arith.constant 0 : index
    %c0_12 = arith.constant 0 : index
    %10 = vector.load %arg4[%c0_10, %c0_11, %c0_12] : memref<4x8x4xf32, #tpu.memory_space<vmem>>, vector<1x8x4xf32>
    %11 = vector.shape_cast %10 : vector<1x8x4xf32> to vector<8x4xf32>
    %c0_13 = arith.constant 0 : index
    %c0_14 = arith.constant 0 : index
    %c0_15 = arith.constant 0 : index
    %12 = vector.load %arg5[%c0_13, %c0_14, %c0_15] : memref<4x8x4xf32, #tpu.memory_space<vmem>>, vector<1x8x4xf32>
    %13 = vector.shape_cast %12 : vector<1x8x4xf32> to vector<8x4xf32>
    %14 = vector.extract_strided_slice %6 {offsets = [0, 0], sizes = [8, 1], strides = [1, 1]} : vector<8x4xf32> to vector<8x1xf32>
    %15 = vector.extract_strided_slice %7 {offsets = [0, 0], sizes = [8, 1], strides = [1, 1]} : vector<8x4xf32> to vector<8x1xf32>
    %16 = vector.broadcast %14 : vector<8x1xf32> to vector<8x4xf32>
    %17 = arith.mulf %16, %11 : vector<8x4xf32>
    %18 = arith.addf %8, %17 : vector<8x4xf32>
    %19 = vector.broadcast %15 : vector<8x1xf32> to vector<8x4xf32>
    %20 = arith.mulf %19, %13 : vector<8x4xf32>
    %21 = arith.subf %18, %20 : vector<8x4xf32>
    %22 = vector.broadcast %14 : vector<8x1xf32> to vector<8x4xf32>
    %23 = arith.mulf %22, %13 : vector<8x4xf32>
    %24 = arith.addf %9, %23 : vector<8x4xf32>
    %25 = vector.broadcast %15 : vector<8x1xf32> to vector<8x4xf32>
    %26 = arith.mulf %25, %11 : vector<8x4xf32>
    %27 = arith.addf %24, %26 : vector<8x4xf32>
    %c1 = arith.constant 1 : index
    %c0_16 = arith.constant 0 : index
    %c0_17 = arith.constant 0 : index
    %28 = vector.load %arg4[%c1, %c0_16, %c0_17] : memref<4x8x4xf32, #tpu.memory_space<vmem>>, vector<1x8x4xf32>
    %29 = vector.shape_cast %28 : vector<1x8x4xf32> to vector<8x4xf32>
    %c1_18 = arith.constant 1 : index
    %c0_19 = arith.constant 0 : index
    %c0_20 = arith.constant 0 : index
    %30 = vector.load %arg5[%c1_18, %c0_19, %c0_20] : memref<4x8x4xf32, #tpu.memory_space<vmem>>, vector<1x8x4xf32>
    %31 = vector.shape_cast %30 : vector<1x8x4xf32> to vector<8x4xf32>
    %32 = vector.extract_strided_slice %6 {offsets = [0, 1], sizes = [8, 1], strides = [1, 1]} : vector<8x4xf32> to vector<8x1xf32>
    %33 = vector.extract_strided_slice %7 {offsets = [0, 1], sizes = [8, 1], strides = [1, 1]} : vector<8x4xf32> to vector<8x1xf32>
    %34 = vector.broadcast %32 : vector<8x1xf32> to vector<8x4xf32>
    %35 = arith.mulf %34, %29 : vector<8x4xf32>
    %36 = arith.addf %21, %35 : vector<8x4xf32>
    %37 = vector.broadcast %33 : vector<8x1xf32> to vector<8x4xf32>
    %38 = arith.mulf %37, %31 : vector<8x4xf32>
    %39 = arith.subf %36, %38 : vector<8x4xf32>
    %40 = vector.broadcast %32 : vector<8x1xf32> to vector<8x4xf32>
    %41 = arith.mulf %40, %31 : vector<8x4xf32>
    %42 = arith.addf %27, %41 : vector<8x4xf32>
    %43 = vector.broadcast %33 : vector<8x1xf32> to vector<8x4xf32>
    %44 = arith.mulf %43, %29 : vector<8x4xf32>
    %45 = arith.addf %42, %44 : vector<8x4xf32>
    %c2 = arith.constant 2 : index
    %c0_21 = arith.constant 0 : index
    %c0_22 = arith.constant 0 : index
    %46 = vector.load %arg4[%c2, %c0_21, %c0_22] : memref<4x8x4xf32, #tpu.memory_space<vmem>>, vector<1x8x4xf32>
    %47 = vector.shape_cast %46 : vector<1x8x4xf32> to vector<8x4xf32>
    %c2_23 = arith.constant 2 : index
    %c0_24 = arith.constant 0 : index
    %c0_25 = arith.constant 0 : index
    %48 = vector.load %arg5[%c2_23, %c0_24, %c0_25] : memref<4x8x4xf32, #tpu.memory_space<vmem>>, vector<1x8x4xf32>
    %49 = vector.shape_cast %48 : vector<1x8x4xf32> to vector<8x4xf32>
    %50 = vector.extract_strided_slice %6 {offsets = [0, 2], sizes = [8, 1], strides = [1, 1]} : vector<8x4xf32> to vector<8x1xf32>
    %51 = vector.extract_strided_slice %7 {offsets = [0, 2], sizes = [8, 1], strides = [1, 1]} : vector<8x4xf32> to vector<8x1xf32>
    %52 = vector.broadcast %50 : vector<8x1xf32> to vector<8x4xf32>
    %53 = arith.mulf %52, %47 : vector<8x4xf32>
    %54 = arith.addf %39, %53 : vector<8x4xf32>
    %55 = vector.broadcast %51 : vector<8x1xf32> to vector<8x4xf32>
    %56 = arith.mulf %55, %49 : vector<8x4xf32>
    %57 = arith.subf %54, %56 : vector<8x4xf32>
    %58 = vector.broadcast %50 : vector<8x1xf32> to vector<8x4xf32>
    %59 = arith.mulf %58, %49 : vector<8x4xf32>
    %60 = arith.addf %45, %59 : vector<8x4xf32>
    %61 = vector.broadcast %51 : vector<8x1xf32> to vector<8x4xf32>
    %62 = arith.mulf %61, %47 : vector<8x4xf32>
    %63 = arith.addf %60, %62 : vector<8x4xf32>
    %c3 = arith.constant 3 : index
    %c0_26 = arith.constant 0 : index
    %c0_27 = arith.constant 0 : index
    %64 = vector.load %arg4[%c3, %c0_26, %c0_27] : memref<4x8x4xf32, #tpu.memory_space<vmem>>, vector<1x8x4xf32>
    %65 = vector.shape_cast %64 : vector<1x8x4xf32> to vector<8x4xf32>
    %c3_28 = arith.constant 3 : index
    %c0_29 = arith.constant 0 : index
    %c0_30 = arith.constant 0 : index
    %66 = vector.load %arg5[%c3_28, %c0_29, %c0_30] : memref<4x8x4xf32, #tpu.memory_space<vmem>>, vector<1x8x4xf32>
    %67 = vector.shape_cast %66 : vector<1x8x4xf32> to vector<8x4xf32>
    %68 = vector.extract_strided_slice %6 {offsets = [0, 3], sizes = [8, 1], strides = [1, 1]} : vector<8x4xf32> to vector<8x1xf32>
    %69 = vector.extract_strided_slice %7 {offsets = [0, 3], sizes = [8, 1], strides = [1, 1]} : vector<8x4xf32> to vector<8x1xf32>
    %70 = vector.broadcast %68 : vector<8x1xf32> to vector<8x4xf32>
    %71 = arith.mulf %70, %65 : vector<8x4xf32>
    %72 = arith.addf %57, %71 : vector<8x4xf32>
    %73 = vector.broadcast %69 : vector<8x1xf32> to vector<8x4xf32>
    %74 = arith.mulf %73, %67 : vector<8x4xf32>
    %75 = arith.subf %72, %74 : vector<8x4xf32>
    %76 = vector.broadcast %68 : vector<8x1xf32> to vector<8x4xf32>
    %77 = arith.mulf %76, %67 : vector<8x4xf32>
    %78 = arith.addf %63, %77 : vector<8x4xf32>
    %79 = vector.broadcast %69 : vector<8x1xf32> to vector<8x4xf32>
    %80 = arith.mulf %79, %65 : vector<8x4xf32>
    %81 = arith.addf %78, %80 : vector<8x4xf32>
    %c0_31 = arith.constant 0 : index
    %c0_32 = arith.constant 0 : index
    %82 = vector.load %arg15[%c0_31, %c0_32] : memref<16x4xf32, #tpu.memory_space<vmem>>, vector<8x4xf32>
    tpu.vector_store %arg15[%c0_31, %c0_32], %75 {strides = array<i32>} : memref<16x4xf32, #tpu.memory_space<vmem>>, vector<8x4xf32>,
    %c8 = arith.constant 8 : index
    %c0_33 = arith.constant 0 : index
    %83 = vector.load %arg15[%c8, %c0_33] : memref<16x4xf32, #tpu.memory_space<vmem>>, vector<8x4xf32>
    tpu.vector_store %arg15[%c8, %c0_33], %81 {strides = array<i32>} : memref<16x4xf32, #tpu.memory_space<vmem>>, vector<8x4xf32>,
    %c0_34 = arith.constant 0 : index
    %c0_35 = arith.constant 0 : index
    %84 = vector.load %arg15[%c0_34, %c0_35] : memref<16x4xf32, #tpu.memory_space<vmem>>, vector<16x4xf32>
    %c0_36 = arith.constant 0 : index
    %c0_37 = arith.constant 0 : index
    %85 = vector.load %arg3[%c0_36, %c0_37] : memref<16x16xf32, #tpu.memory_space<vmem>>, vector<16x16xf32>
    %cst_38 = arith.constant dense<0.000000e+00> : vector<16x4xf32>
    %86 = tpu.matmul %85, %84, %cst_38 {dimension_numbers = #tpu.dot_dimension_numbers<[1], [0], [0], [1], [0, 0, 1, 1], [], []>} : vector<16x16xf32>, vector<16x4xf32>, vector<16x4xf32> -> vector<16x4xf32>
    %c0_39 = arith.constant 0 : index
    %c0_40 = arith.constant 0 : index
    %87 = vector.load %arg16[%c0_39, %c0_40] : memref<16x4xf32, #tpu.memory_space<vmem>>, vector<16x4xf32>
    tpu.vector_store %arg16[%c0_39, %c0_40], %86 {strides = array<i32>} : memref<16x4xf32, #tpu.memory_space<vmem>>, vector<16x4xf32>,
    %c0_41 = arith.constant 0 : index
    %c0_42 = arith.constant 0 : index
    %88 = vector.load %arg16[%c0_41, %c0_42] : memref<16x4xf32, #tpu.memory_space<vmem>>, vector<16x4xf32>
    %89 = arith.truncf %88 : vector<16x4xf32> to vector<16x4xbf16>
    %c0_43 = arith.constant 0 : index
    %c0_44 = arith.constant 0 : index
    %90 = vector.load %arg6[%c0_43, %c0_44] : memref<4x256xbf16, #tpu.memory_space<vmem>>, vector<4x256xbf16>
    %cst_45 = arith.constant dense<0.000000e+00> : vector<16x256xf32>
    %91 = tpu.matmul %89, %90, %cst_45 {dimension_numbers = #tpu.dot_dimension_numbers<[1], [0], [0], [1], [0, 0, 1, 1], [], []>} : vector<16x4xbf16>, vector<4x256xbf16>, vector<16x256xf32> -> vector<16x256xf32>
    %c0_46 = arith.constant 0 : index
    %c0_47 = arith.constant 0 : index
    %92 = vector.load %arg7[%c0_46, %c0_47] : memref<1x256xf32, #tpu.memory_space<vmem>>, vector<1x256xf32>
    %93 = vector.broadcast %92 : vector<1x256xf32> to vector<16x256xf32>
    %94 = arith.addf %91, %93 : vector<16x256xf32>
    %cst_48 = arith.constant 0.000000e+00 : f32
    %95 = vector.broadcast %cst_48 : f32 to vector<16x256xf32>
    %96 = arith.maximumf %94, %95 : vector<16x256xf32>
    %97 = arith.truncf %96 : vector<16x256xf32> to vector<16x256xbf16>
    %98 = vector.extract_strided_slice %97 {offsets = [0, 0], sizes = [16, 128], strides = [1, 1]} : vector<16x256xbf16> to vector<16x128xbf16>
    %c0_49 = arith.constant 0 : index
    %c0_50 = arith.constant 0 : index
    %99 = vector.load %arg8[%c0_49, %c0_50] : memref<128x4xbf16, #tpu.memory_space<vmem>>, vector<128x4xbf16>
    %cst_51 = arith.constant dense<0.000000e+00> : vector<16x4xf32>
    %100 = tpu.matmul %98, %99, %cst_51 {dimension_numbers = #tpu.dot_dimension_numbers<[1], [0], [0], [1], [0, 0, 1, 1], [], []>} : vector<16x128xbf16>, vector<128x4xbf16>, vector<16x4xf32> -> vector<16x4xf32>
    %c0_52 = arith.constant 0 : index
    %c0_53 = arith.constant 0 : index
    %101 = vector.load %arg9[%c0_52, %c0_53] : memref<1x4xf32, #tpu.memory_space<vmem>>, vector<1x4xf32>
    %102 = vector.broadcast %101 : vector<1x4xf32> to vector<16x4xf32>
    %103 = arith.addf %100, %102 : vector<16x4xf32>
    %104 = vector.shape_cast %103 : vector<16x4xf32> to vector<1x16x4xf32>
    %c0_54 = arith.constant 0 : index
    %c0_55 = arith.constant 0 : index
    %c0_56 = arith.constant 0 : index
    %105 = vector.load %arg12[%c0_54, %c0_55, %c0_56] : memref<1x16x4xf32, #tpu.memory_space<vmem>>, vector<1x16x4xf32>
    tpu.vector_store %arg12[%c0_54, %c0_55, %c0_56], %104 {strides = array<i32>} : memref<1x16x4xf32, #tpu.memory_space<vmem>>, vector<1x16x4xf32>,
    %106 = vector.extract_strided_slice %97 {offsets = [0, 128], sizes = [16, 128], strides = [1, 1]} : vector<16x256xbf16> to vector<16x128xbf16>
    %c0_57 = arith.constant 0 : index
    %c0_58 = arith.constant 0 : index
    %107 = vector.load %arg10[%c0_57, %c0_58] : memref<128x4xbf16, #tpu.memory_space<vmem>>, vector<128x4xbf16>
    %cst_59 = arith.constant dense<0.000000e+00> : vector<16x4xf32>
    %108 = tpu.matmul %106, %107, %cst_59 {dimension_numbers = #tpu.dot_dimension_numbers<[1], [0], [0], [1], [0, 0, 1, 1], [], []>} : vector<16x128xbf16>, vector<128x4xbf16>, vector<16x4xf32> -> vector<16x4xf32>
    %c0_60 = arith.constant 0 : index
    %c0_61 = arith.constant 0 : index
    %109 = vector.load %arg11[%c0_60, %c0_61] : memref<1x4xf32, #tpu.memory_space<vmem>>, vector<1x4xf32>
    %110 = vector.broadcast %109 : vector<1x4xf32> to vector<16x4xf32>
    %111 = arith.addf %108, %110 : vector<16x4xf32>
    %112 = vector.shape_cast %111 : vector<16x4xf32> to vector<1x16x4xf32>
    %c0_62 = arith.constant 0 : index
    %c0_63 = arith.constant 0 : index
    %c0_64 = arith.constant 0 : index
    %113 = vector.load %arg13[%c0_62, %c0_63, %c0_64] : memref<1x16x4xf32, #tpu.memory_space<vmem>>, vector<1x16x4xf32>
    tpu.vector_store %arg13[%c0_62, %c0_63, %c0_64], %112 {strides = array<i32>} : memref<1x16x4xf32, #tpu.memory_space<vmem>>, vector<1x16x4xf32>,
    return
  }
  func.func @transform_0(%arg0: i32) -> (i32, i32, i32) {
    %c0_i32 = arith.constant 0 : i32
    %c0_i32_0 = arith.constant 0 : i32
    %c0_i32_1 = arith.constant 0 : i32
    return %arg0, %c0_i32, %c0_i32_0 : i32, i32, i32
  }
  func.func @transform_1(%arg0: i32) -> (i32, i32) {
    %c0_i32 = arith.constant 0 : i32
    %c0_i32_0 = arith.constant 0 : i32
    %c0_i32_1 = arith.constant 0 : i32
    return %c0_i32, %c0_i32_0 : i32, i32
  }
  func.func @transform_2(%arg0: i32) -> (i32, i32) {
    %c0_i32 = arith.constant 0 : i32
    %c0_i32_0 = arith.constant 0 : i32
    %c0_i32_1 = arith.constant 0 : i32
    return %c0_i32, %c0_i32_0 : i32, i32
  }
  func.func @transform_3(%arg0: i32) -> (i32, i32, i32) {
    %c0_i32 = arith.constant 0 : i32
    %c0_i32_0 = arith.constant 0 : i32
    %c0_i32_1 = arith.constant 0 : i32
    %c0_i32_2 = arith.constant 0 : i32
    return %c0_i32, %c0_i32_0, %c0_i32_1 : i32, i32, i32
  }
  func.func @transform_4(%arg0: i32) -> (i32, i32, i32) {
    %c0_i32 = arith.constant 0 : i32
    %c0_i32_0 = arith.constant 0 : i32
    %c0_i32_1 = arith.constant 0 : i32
    %c0_i32_2 = arith.constant 0 : i32
    return %c0_i32, %c0_i32_0, %c0_i32_1 : i32, i32, i32
  }
  func.func @transform_5(%arg0: i32) -> (i32, i32) {
    %c0_i32 = arith.constant 0 : i32
    %c0_i32_0 = arith.constant 0 : i32
    %c0_i32_1 = arith.constant 0 : i32
    return %c0_i32, %c0_i32_0 : i32, i32
  }
  func.func @transform_6(%arg0: i32) -> (i32, i32) {
    %c0_i32 = arith.constant 0 : i32
    %c0_i32_0 = arith.constant 0 : i32
    %c0_i32_1 = arith.constant 0 : i32
    return %c0_i32, %c0_i32_0 : i32, i32
  }
  func.func @transform_7(%arg0: i32) -> (i32, i32) {
    %c0_i32 = arith.constant 0 : i32
    %c0_i32_0 = arith.constant 0 : i32
    %c0_i32_1 = arith.constant 0 : i32
    return %c0_i32, %c0_i32_0 : i32, i32
  }
  func.func @transform_8(%arg0: i32) -> (i32, i32) {
    %c0_i32 = arith.constant 0 : i32
    %c0_i32_0 = arith.constant 0 : i32
    %c0_i32_1 = arith.constant 0 : i32
    return %c0_i32, %c0_i32_0 : i32, i32
  }
  func.func @transform_9(%arg0: i32) -> (i32, i32) {
    %c0_i32 = arith.constant 0 : i32
    %c0_i32_0 = arith.constant 0 : i32
    %c0_i32_1 = arith.constant 0 : i32
    return %c0_i32, %c0_i32_0 : i32, i32
  }
  func.func @transform_10(%arg0: i32) -> (i32, i32) {
    %c0_i32 = arith.constant 0 : i32
    %c0_i32_0 = arith.constant 0 : i32
    %c0_i32_1 = arith.constant 0 : i32
    return %c0_i32, %c0_i32_0 : i32, i32
  }
  func.func @transform_11(%arg0: i32) -> (i32, i32, i32) {
    %c0_i32 = arith.constant 0 : i32
    %c0_i32_0 = arith.constant 0 : i32
    %c0_i32_1 = arith.constant 0 : i32
    return %arg0, %c0_i32, %c0_i32_0 : i32, i32, i32
  }
  func.func @transform_12(%arg0: i32) -> (i32, i32, i32) {
    %c0_i32 = arith.constant 0 : i32
    %c0_i32_0 = arith.constant 0 : i32
    %c0_i32_1 = arith.constant 0 : i32
    return %arg0, %c0_i32, %c0_i32_0 : i32, i32, i32
  }
}

</mosaic_0001>

<bundles_post_ra>
// kernel: tpu_custom_call.1
= control target key start
LH: loop header
LB: loop body
LE: loop exit
PB: predicated region body
PF: predicated region fallthrough
CT: control target
= control target key end

     0   :  { %s1330_s21 = smov 0   ;;  %s1466_s0 = inlined_call_operand.vmem [shape: f32[2,16,4], index: 0, kind: input, shape index: {}]   ;;  %s1467_s1 = inlined_call_operand.vmem [shape: f32[16,16], index: 1, kind: input, shape index: {}]   ;;  %s1468_s2 = inlined_call_operand.vmem [shape: f32[16,16], index: 2, kind: input, shape index: {}]   ;;  %s1469_s3 = inlined_call_operand.vmem [shape: f32[4,8,4], index: 3, kind: input, shape index: {}]   ;;  %s1470_s4 = inlined_call_operand.vmem [shape: f32[4,8,4], index: 4, kind: input, shape index: {}]   ;;  %s1471_s5 = inlined_call_operand.vmem [shape: bf16[4,256], index: 5, kind: input, shape index: {}]   ;;  %s1472_s6 = inlined_call_operand.vmem [shape: f32[1,256], index: 6, kind: input, shape index: {}]   ;;  %s1473_s7 = inlined_call_operand.vmem [shape: bf16[128,4], index: 7, kind: input, shape index: {}]   ;;  %s1474_s8 = inlined_call_operand.vmem [shape: f32[1,4], index: 8, kind: input, shape index: {}]   ;;  %s1475_s9 = inlined_call_operand.vmem [shape: bf16[128,4], index: 9, kind: input, shape index: {}]   ;;  %s1476_s10 = inlined_call_operand.vmem [shape: f32[1,4], index: 10, kind: input, shape index: {}]   ;;  %s1477_s11 = inlined_call_operand.vmem [shape: f32[2,16,4], index: 11, kind: output, shape index: {0}]   ;;  %s1478_s12 = inlined_call_operand.vmem [shape: f32[2,16,4], index: 12, kind: output, shape index: {1}]  }
   0x1 LB: > { %s1088_s22 = sadd.s32 4294967295, %s1257_s21   ;;  %p1092_p0 = scmp.ge.s32.totalorder %s1257_s21, 1  ;;  %s1257_s21 = sphi %s1330_s21, %s23_s21  }
   0x2   : > { %p365_p1 = scmp.lt.s32.totalorder %s1257_s21, 3 }
   0x4   : > { %p366_p2 = pnand %p1092_p0, %p365_p1 }
   0x5   : > { %p412_p3 = scmp.lt.s32.totalorder (!%p366_p2), %s1088_s22, 1 }
   0x6   : > { %369 = sbr.rel (%p366_p2) target bundleno = 986 (0x3da), region = 64 }
   0xb   : > { %v435_v0 = vld [vmem:[%s1467_s1] sm:$0xff]  ;;  %vm437_vm0 = vcmask 130048   ;;  %v1259_v1 = vmov 1   ;;  %s1480_s22 = smov (!%p412_p3, %s1088_s22), 1  ;;  %v1260_v2 = vmov 0   ;;  %vm430_vm1 = vcmask 31744  }
   0xc   : > { %1165 = vmatprep.mubr.msk.f32.mxu0 %vm437_vm0, %v435_v0  ;;  %1230 = vset.pattern.permute.xlu1 %v1259_v1  ;;  %s1342_s25 = sshll.u32 %s1480_s22, 4  ;;  %v436_v7 = vld [vmem:[%s1467_s1 + $0x8] sm:$0xff]  ;;  %v1261_v10 = vmov 2   ;;  %v1262_v11 = vmov 3   ;;  %v603_v12 = vld [vmem:[%s1468_s2] sm:$0xff]  ;;  %v1103_v29 = vld [vmem:[%s1469_s3 + $0x10] sm:$0xff] }
   0xd   : > { %1229 = vset.pattern.permute.xlu0 %v1260_v2  ;;  %s416_s28 = scalar_lea.vmem %s1466_s0, %s1342_s25  ;;  %1172 = vmatprep.mubr.msk.f32.mxu1 %vm437_vm0, %v603_v12  ;;  %v519_v15 = vld [vmem:[%s1469_s3] sm:$0xff]  ;;  %v1101_v23 = vld [vmem:[%s1469_s3 + $0x8] sm:$0xff]  ;;  %v1104_v30 = vld [vmem:[%s1470_s4 + $0x10] sm:$0xff]  ;;  %vm716_vm2 = vcmask 1041408   ;;  %vm1264_vm3 = vmmov 0   ;;  %s421_s27 = scalar_lea.vmem %s1477_s11, %s1342_s25 }
   0xe   : > { %v429_v3 = vld [vmem:[%s416_s28 + $0x8] sm:$0xff]  ;;  %v428_v4 = vld [vmem:[%s416_s28] sm:$0xff]  ;;  %v1105_v41 = vld [vmem:[%s1469_s3 + $0x18] sm:$0xff]  ;;  %s426_s14 = scalar_lea.vmem %s1478_s12, %s1342_s25 }
   0xf   : > { %432 = vst.msk [vmem:[#allocation2 + $0x8] sm:$0xff] %vm430_vm1, %v429_v3  ;;  %431 = vst.msk [vmem:[#allocation2] sm:$0xff] %vm430_vm1, %v428_v4  ;;  %v520_v16 = vld [vmem:[%s1470_s4] sm:$0xff]  ;;  %v1102_v24 = vld [vmem:[%s1470_s4 + $0x8] sm:$0xff] }
  0x10   : > { %v1106_v42 = vld [vmem:[%s1470_s4 + $0x18] sm:$0xff]  ;;  %v604_v61 = vld [vmem:[%s1468_s2 + $0x8] sm:$0xff]  ;;  %v1109_v62 = vld.sshfl [vmem:[%s1471_s5] sm:$0x33 pattern:$0x76325410] }
  0x11   : > { %v712_v63 = vcombine.high %v1109_v62, %v1109_v62  ;;  %v718_v0 = vsel %vm716_vm2, %v1109_v62, 0  ;;  %v1235_v1 = vld [vmem:[%s1473_s7 + $0x38] sm:$0xff]   ;;  %v1237_v3 = vld [vmem:[%s1473_s7 + $0x30] sm:$0xff]   ;;  %v1239_v4 = vld [vmem:[%s1473_s7 + $0x28] sm:$0xff]  }
  0x16   : > { %v434_v5 = vld [vmem:[#allocation2 + $0x8] sm:$0xff]  ;;  %v433_v6 = vld [vmem:[#allocation2] sm:$0xff] }
  0x17   : > { %1161 = vmatprep.subr.mxu0 %v434_v5 }
  0x18   : > { %1162 = vmatpush3.msra.mxu0 %v434_v5  ;;  %v1241_v5 = vld [vmem:[%s1473_s7 + $0x20] sm:$0xff]  }
  0x19   : > { %1163 = vmatprep.subr.mxu0 %v433_v6 }
  0x1a   : > { %1164 = vmatpush3.msra.mxu0 %v433_v6  ;;  %v1243_v6 = vld [vmem:[%s1473_s7 + $0x18] sm:$0xff]  }
  0x1b   : > { %1166 = vmatmul.mubr.msk.f32.vlgmr.msra.gmra.mxu0 %vm437_vm0, %v436_v7  ;;  %1110 = vmatprep.subr.msk.bf16.mxu0 %vm716_vm2, %v712_v63 }
  0x1c   : > { %755 = vmatprep.mubr.bf16.mxu0 %v1260_v2  ;;  %738 = vmatpush1.bf16.msra.mxu0 %v718_v0  ;;  %v1263_v2 = vmov 0.0  }
  0x1d   : > { %1195 = vmatprep.subr.bf16.mxu0 %v1263_v2 }
  0xdb   : > { %v1167_v8 = vpop.f32.mrf.mxu0 }
  0xdc   : > { %550 = vperm.xlu1 %1230, %v1167_v8   ;;  %530 = vperm.xlu0 %1229, %v1167_v8  }
  0xdd   : > { %v510_v9 = vpop.f32.mrf.mxu0 }
  0xe0   : > { %544 = vperm.xlu1 %1230, %v510_v9   ;;  %523 = vperm.xlu0 %1229, %v510_v9  }
  0xe4   : > { %1231 = vset.pattern.permute.xlu1 %v1261_v10  ;;  %1232 = vset.pattern.permute.xlu0 %v1261_v10 }
  0xe5   : > { %570 = vperm.xlu1 %1231, %v1167_v8   ;;  %564 = vperm.xlu0 %1232, %v510_v9  }
  0xe9   : > { %1233 = vset.pattern.permute.xlu1 %v1262_v11  ;;  %1234 = vset.pattern.permute.xlu0 %v1262_v11  ;;  %v1236_v11 = vld [vmem:[%s1475_s9 + $0x38] sm:$0xff]  }
  0xea   : > { %584 = vperm.xlu1 %1233, %v510_v9   ;;  %590 = vperm.xlu0 %1234, %v1167_v8  }
 0x157   : > { %v551_v13 = vpop.permute.xlu1 %550  ;;  %v531_v14 = vpop.permute.xlu0 %530 }
 0x158   : > { %v533_v19 = vmul.f32 %v531_v14, %v520_v16  ;;  %v537_v20 = vmul.f32 %v531_v14, %v519_v15  ;;  %v553_v31 = vmul.f32 %v1102_v24, %v551_v13  ;;  %v557_v32 = vmul.f32 %v1101_v23, %v551_v13  ;;  %v1238_v13 = vld [vmem:[%s1475_s9 + $0x30] sm:$0xff]   ;;  %v1240_v14 = vld [vmem:[%s1475_s9 + $0x28] sm:$0xff]  }
 0x15b   : > { %v545_v17 = vpop.permute.xlu1 %544  ;;  %v524_v18 = vpop.permute.xlu0 %523 }
 0x15c   : > { %v526_v21 = vmul.f32 %v524_v18, %v519_v15  ;;  %v535_v22 = vmul.f32 %v524_v18, %v520_v16  ;;  %v547_v25 = vmul.f32 %v1101_v23, %v545_v17  ;;  %v555_v26 = vmul.f32 %v1102_v24, %v545_v17  ;;  %v1242_v15 = vld [vmem:[%s1475_s9 + $0x20] sm:$0xff]   ;;  %v1244_v16 = vld [vmem:[%s1475_s9 + $0x18] sm:$0xff]   ;;  %v1245_v17 = vld [vmem:[%s1473_s7 + $0x10] sm:$0xff]  }
 0x15d   : > { %v1246_v18 = vld [vmem:[%s1475_s9 + $0x10] sm:$0xff]   ;;  %v694_v23 = vlaneseq }
 0x15e   : > { %v534_v27 = vsub.f32 %v526_v21, %v533_v19  ;;  %v538_v28 = vadd.f32 %v537_v20, %v535_v22  ;;  %v1247_v19 = vld [vmem:[%s1473_s7 + $0x8] sm:$0xff]   ;;  %v1249_v21 = vld [vmem:[%s1473_s7] sm:$0xff]  }
 0x15f   : > { %v1248_v20 = vld [vmem:[%s1475_s9 + $0x8] sm:$0xff]   ;;  %v1250_v22 = vld [vmem:[%s1475_s9] sm:$0xff]   ;;  %v695_v24 = vshrl.u32 %v694_v23, 7 }
 0x160   : > { %v548_v33 = vadd.f32 %v547_v25, %v534_v27  ;;  %v556_v34 = vadd.f32 %v555_v26, %v538_v28  ;;  %v571_v35 = vpop.permute.xlu1 %570  ;;  %v565_v36 = vpop.permute.xlu0 %564  ;;  %v692_v26 = vld [vmem:[%s1472_s6] sm:$0x3] }
 0x161   : > { %v567_v37 = vmul.f32 %v1103_v29, %v565_v36  ;;  %v575_v38 = vmul.f32 %v1104_v30, %v565_v36  ;;  %v573_v43 = vmul.f32 %v1104_v30, %v571_v35  ;;  %v577_v44 = vmul.f32 %v1103_v29, %v571_v35 }
 0x162   : > { %v554_v39 = vsub.f32 %v548_v33, %v553_v31  ;;  %v558_v40 = vadd.f32 %v557_v32, %v556_v34  ;;  %v696_v25 = vsub.s32 0, %v695_v24  ;;  %v700_v27 = vsub.s32 1, %v695_v24 }
 0x164   : > { %v568_v45 = vadd.f32 %v567_v37, %v554_v39  ;;  %v576_v46 = vadd.f32 %v575_v38, %v558_v40  ;;  %v697_v28 = vrot.slane %v692_v26, %v696_v25  ;;  %v701_v30 = vrot.slane %v692_v26, %v700_v27 }
 0x165   : > { %v585_v47 = vpop.permute.xlu1 %584  ;;  %v591_v48 = vpop.permute.xlu0 %590 }
 0x166   : > { %v574_v49 = vsub.f32 %v568_v45, %v573_v43  ;;  %v578_v50 = vadd.f32 %v577_v44, %v576_v46  ;;  %v587_v51 = vmul.f32 %v1105_v41, %v585_v47  ;;  %v595_v52 = vmul.f32 %v1106_v42, %v585_v47  ;;  %v1112_v44 = vld [vmem:[%s1474_s8] ss:$0 sm:$0xff] }
 0x167   : > { %v593_v55 = vmul.f32 %v1106_v42, %v591_v48  ;;  %v597_v56 = vmul.f32 %v1105_v41, %v591_v48  ;;  %v1121_v46 = vld [vmem:[%s1476_s10] ss:$0 sm:$0xff] }
 0x168   : > { %v588_v53 = vadd.f32 %v587_v51, %v574_v49  ;;  %v596_v54 = vadd.f32 %v595_v52, %v578_v50 }
 0x16a   : > { %v594_v57 = vsub.f32 %v588_v53, %v593_v55  ;;  %v598_v58 = vadd.f32 %v597_v56, %v596_v54 }
 0x16c   : > { %599 = vst.msk [vmem:[#allocation3] sm:$0xff] %vm430_vm1, %v594_v57  ;;  %600 = vst.msk [vmem:[#allocation3 + $0x8] sm:$0xff] %vm430_vm1, %v598_v58 }
 0x173   : > { %v602_v59 = vld [vmem:[#allocation3 + $0x8] sm:$0xff]  ;;  %v601_v60 = vld [vmem:[#allocation3] sm:$0xff] }
 0x174   : > { %1168 = vmatprep.subr.mxu1 %v602_v59 }
 0x175   : > { %1169 = vmatpush3.msra.mxu1 %v602_v59 }
 0x176   : > { %1170 = vmatprep.subr.mxu1 %v601_v60 }
 0x177   : > { %1171 = vmatpush3.msra.mxu1 %v601_v60 }
 0x178   : > { %1173 = vmatmul.mubr.msk.f32.vlgmr.msra.gmra.mxu1 %vm437_vm0, %v604_v61  ;;  %1175 = vmatprep.subr.bf16.mxu1 %v1263_v2 }
 0x179   : > { %1176 = vmatpush3.bf16.msra.mxu1 %v1235_v1  ;;  %1191 = vmatprep.mubr.msk.bf16.mxu1 %vm1264_vm3, %v1263_v2 }
 0x17a   : > { %1177 = vmatprep.subr.bf16.mxu1 %v1263_v2 }
 0x17d   : > { %1178 = vmatpush3.bf16.msra.mxu1 %v1237_v3 }
 0x17e   : > { %1179 = vmatprep.subr.bf16.mxu1 %v1263_v2 }
 0x181   : > { %1180 = vmatpush3.bf16.msra.mxu1 %v1239_v4 }
 0x182   : > { %1181 = vmatprep.subr.bf16.mxu1 %v1263_v2 }
 0x185   : > { %1182 = vmatpush3.bf16.msra.mxu1 %v1241_v5 }
 0x186   : > { %1183 = vmatprep.subr.bf16.mxu1 %v1263_v2 }
 0x189   : > { %1184 = vmatpush3.bf16.msra.mxu1 %v1243_v6 }
 0x18a   : > { %1185 = vmatprep.subr.bf16.mxu1 %v1263_v2 }
 0x18d   : > { %1186 = vmatpush3.bf16.msra.mxu1 %v1245_v17 }
 0x18e   : > { %1187 = vmatprep.subr.bf16.mxu1 %v1263_v2 }
 0x191   : > { %1188 = vmatpush3.bf16.msra.mxu1 %v1247_v19 }
 0x192   : > { %1189 = vmatprep.subr.bf16.mxu1 %v1263_v2 }
 0x195   : > { %1190 = vmatpush3.bf16.msra.mxu1 %v1249_v21 }
 0x238   : > { %v1174_v7 = vpop.f32.mrf.mxu1 }
 0x239   : > { %687 = vst.msk [vmem:[#allocation4 + $0x8] sm:$0xff] %vm430_vm1, %v1174_v7 }
 0x23a   : > { %v677_v8 = vpop.f32.mrf.mxu1 }
 0x23b   : > { %686 = vst.msk [vmem:[#allocation4] sm:$0xff] %vm430_vm1, %v677_v8 }
 0x240   : > { %v689_v10 = vld [vmem:[#allocation4 + $0x8] sm:$0xff] }
 0x242   : > { %v688_v9 = vld [vmem:[#allocation4] sm:$0xff] }
 0x243   : > { %v690_v12 = vpack.c.bf16 %v689_v10, %v688_v9 }
 0x245   : > { %1111 = vmatmul.mubr.msk.bf16.vlgmr.msra.gmra.mxu0 %vm430_vm1, %v690_v12 }
 0x246   : > { %1196 = vmatpush3.bf16.msra.mxu0 %v1236_v11  ;;  %1211 = vmatprep.mubr.msk.bf16.mxu0 %vm1264_vm3, %v1263_v2 }
 0x247   : > { %1197 = vmatprep.subr.bf16.mxu0 %v1263_v2 }
 0x24a   : > { %1198 = vmatpush3.bf16.msra.mxu0 %v1238_v13 }
 0x24b   : > { %1199 = vmatprep.subr.bf16.mxu0 %v1263_v2 }
 0x24e   : > { %1200 = vmatpush3.bf16.msra.mxu0 %v1240_v14 }
 0x24f   : > { %1201 = vmatprep.subr.bf16.mxu0 %v1263_v2 }
 0x252   : > { %1202 = vmatpush3.bf16.msra.mxu0 %v1242_v15 }
 0x253   : > { %1203 = vmatprep.subr.bf16.mxu0 %v1263_v2 }
 0x256   : > { %1204 = vmatpush3.bf16.msra.mxu0 %v1244_v16 }
 0x257   : > { %1205 = vmatprep.subr.bf16.mxu0 %v1263_v2 }
 0x25a   : > { %1206 = vmatpush3.bf16.msra.mxu0 %v1246_v18 }
 0x25b   : > { %1207 = vmatprep.subr.bf16.mxu0 %v1263_v2 }
 0x25e   : > { %1208 = vmatpush3.bf16.msra.mxu0 %v1248_v20 }
 0x25f   : > { %1209 = vmatprep.subr.bf16.mxu0 %v1263_v2 }
 0x262   : > { %1210 = vmatpush3.bf16.msra.mxu0 %v1250_v22 }
 0x305   : > { %v757_v29 = vpop.f32.mrf.mxu0 }
 0x306   : > { %v758_v32 = vadd.f32 %v757_v29, %v697_v28 }
 0x307   : > { %v759_v31 = vpop.f32.mrf.mxu0 }
 0x308   : > { %v760_v34 = vadd.f32 %v759_v31, %v701_v30  ;;  %v766_v37 = vmax.f32 %v758_v32, 0.0 }
 0x309   : > { %v761_v33 = vpop.f32.mrf.mxu0 }
 0x30a   : > { %v762_v35 = vadd.f32 %v761_v33, %v697_v28  ;;  %v767_v40 = vmax.f32 %v760_v34, 0.0 }
 0x30b   : > { %v763_v36 = vpop.f32.mrf.mxu0 }
 0x30c   : > { %v768_v38 = vmax.f32 %v762_v35, 0.0  ;;  %v764_v39 = vadd.f32 %v763_v36, %v701_v30 }
 0x30e   : > { %v770_v41 = vpack.c.bf16 %v768_v38, %v766_v37  ;;  %v769_v42 = vmax.f32 %v764_v39, 0.0 }
 0x310   : > { %v771_v43 = vpack.c.bf16 %v769_v42, %v767_v40  ;;  %1192 = vmatmul.mubr.bf16.vlgmr.msra.gmra.mxu1 %v770_v41 }
 0x312   : > { %1212 = vmatmul.mubr.bf16.vlgmr.msra.gmra.mxu0 %v771_v43 }
 0x3d0   : > { %v877_v45 = vpop.f32.mrf.mxu1 }
 0x3d1   : > { %v878_v47 = vadd.f32 %v1112_v44, %v877_v45 }
 0x3d2   : > { %v1193_v48 = vpop.f32.mrf.mxu1  ;;  %v991_v49 = vpop.f32.mrf.mxu0 }
 0x3d3   : > { %884 = vst.msk [vmem:[%s421_s27] sm:$0xff] %vm430_vm1, %v878_v47  ;;  %v992_v50 = vadd.f32 %v1121_v46, %v991_v49 }
 0x3d4   : > { %v880_v51 = vpop.f32.mrf.mxu1  ;;  %v1213_v52 = vpop.f32.mrf.mxu0 }
 0x3d5   : > { %998 = vst.msk [vmem:[%s426_s14] sm:$0xff] %vm430_vm1, %v992_v50  ;;  %v881_v53 = vadd.f32 %v1112_v44, %v880_v51 }
 0x3d6   : > { %v1194_v54 = vpop.f32.mrf.mxu1  ;;  %v994_v55 = vpop.f32.mrf.mxu0 }
 0x3d7   : > { %885 = vst.msk [vmem:[%s421_s27 + $0x8] sm:$0xff] %vm430_vm1, %v881_v53  ;;  %v995_v56 = vadd.f32 %v1121_v46, %v994_v55 }
 0x3d8   : > { %v1214_v57 = vpop.f32.mrf.mxu0 }
 0x3d9   : > { %999 = vst.msk [vmem:[%s426_s14 + $0x8] sm:$0xff] %vm430_vm1, %v995_v56 }
 0x3da PF: > { %s23_s21 = sadd.s32 1, %s1257_s21  }
 0x3db   : > { %p20_p4 = scmp.ge.s32.totalorder %s23_s21, 4  }
 0x3dd   :  { %22 = sbr.rel (!%p20_p4) target bundleno = 1 (0x1), region = 112 }

</bundles_post_ra>
